<compile_context>
chip_gen: v7x
topology: tpu7x:2x2x1
jax: 0.10.0
libtpu: 0.0.40
codegen_flags: <defaults>
</compile_context>

<pallas_src>
import jax
import jax.numpy as jnp
from jax.experimental import pallas as pl
from jax.experimental.pallas import tpu as pltpu

C_IN = 128   # conv1 in/out channels
C_OUT = 2    # conv2 out channels (segmentation logits)


def _seg_kernel(x_ref, w1s_ref, shift_ref, w2t_ref, b2_ref, o_ref):
    # x_ref:     (TM, 128)  f32   point rows, channels on lanes
    # w1s_ref:   (128, 128) bf16  conv1 weight^T with BN scale folded in
    # shift_ref: (1, 128)   f32   folded BN shift (beta - rm*scale + b1*scale)
    # w2t_ref:   (128, 2)   bf16  conv2 weight^T (in_ch, out_ch)
    # b2_ref:    (1, 2)     f32   conv2 bias
    # o_ref:     (TM, 2)          per-point logits
    x = x_ref[...].astype(jnp.bfloat16)        # cast fused in-kernel (VPU slot)
    h = jnp.dot(x, w1s_ref[...], preferred_element_type=jnp.float32)
    # folded BN(eval) + conv1 bias, then ReLU (Dropout is identity in eval)
    h = jnp.maximum(h + shift_ref[...], 0.0)
    z = jnp.dot(h.astype(jnp.bfloat16), w2t_ref[...],
                preferred_element_type=jnp.float32) + b2_ref[...]
    # NOTE: log_softmax in the torch source is dead code -> intentionally not emitted.
    o_ref[...] = z.astype(o_ref.dtype)


def _round_up(x, m):
    return ((x + m - 1) // m) * m


def seg_net_forward(global_features, point_features, params, *, tm=4096,
                    out_dtype=jnp.float32,
                    vmem_limit_bytes=32 * 1024 * 1024):
    """point_features: (B, N, 128) -> (B, N, 2) logits. global_features unused."""
    del global_features  # unused by the torch module's forward
    B, N, C = point_features.shape
    assert C == C_IN
    assert tm % 16 == 0, "tm must be a multiple of 16 (bf16 sublane packing)"
    M = B * N

    # Clamp the row tile to the problem size (still a multiple of 16).  The last
    # grid step may be a partial block: Pallas clamps the read DMA and discards
    # out-of-bounds output rows; valid rows are unaffected (row-independent op).
    tm_eff = max(16, min(tm, _round_up(M, 16)))
    grid = (pl.cdiv(M, tm_eff),)

    w1, b1 = params["conv1_w"], params["conv1_b"]            # (128,128,1), (128,)
    w2, b2 = params["conv2_w"], params["conv2_b"]            # (2,128,1),   (2,)
    gamma, beta = params["bn1_w"], params["bn1_b"]           # (128,), (128,)
    rmean, rvar = params["bn1_rm"], params["bn1_rv"]         # (128,), (128,)
    eps = 1e-5

    # Fold conv1 bias + BatchNorm (eval) into the conv1 weight + a per-channel shift.
    scale = gamma / jnp.sqrt(rvar + eps)                      # (128,)
    shift = (beta - rmean * scale + b1 * scale).astype(jnp.float32)
    w1s = (jnp.transpose(w1[:, :, 0]) * scale[None, :]).astype(jnp.bfloat16)  # (in,out)
    w2t = jnp.transpose(w2[:, :, 0]).astype(jnp.bfloat16)                     # (128,2)
    b2f = b2.astype(jnp.float32).reshape(1, C_OUT)

    # No wrapper-side cast or pad: reshape is layout-preserving (free).
    x = point_features.reshape(M, C_IN)

    out_itemsize = jnp.dtype(out_dtype).itemsize
    cost = pl.CostEstimate(
        flops=2 * M * C_IN * (C_IN + C_OUT),
        transcendentals=0,
        bytes_accessed=(M * (C_IN * x.dtype.itemsize + C_OUT * out_itemsize)
                        + C_IN * C_IN * 2 + C_IN * 4 + C_IN * C_OUT * 2 + C_OUT * 4),
    )

    out = pl.pallas_call(
        _seg_kernel,
        out_shape=jax.ShapeDtypeStruct((M, C_OUT), out_dtype),
        grid_spec=pltpu.PrefetchScalarGridSpec(
            num_scalar_prefetch=0,
            grid=grid,
            in_specs=[
                pl.BlockSpec((tm_eff, C_IN), lambda i: (i, 0)),    # x rows (f32)
                pl.BlockSpec((C_IN, C_IN), lambda i: (0, 0)),      # w1s (bf16)
                pl.BlockSpec((1, C_IN), lambda i: (0, 0)),         # shift (f32)
                pl.BlockSpec((C_IN, C_OUT), lambda i: (0, 0)),     # w2t (bf16)
                pl.BlockSpec((1, C_OUT), lambda i: (0, 0)),        # b2 (f32)
            ],
            out_specs=pl.BlockSpec((tm_eff, C_OUT), lambda i: (i, 0)),
        ),
        compiler_params=pltpu.CompilerParams(
            dimension_semantics=("parallel",),
            vmem_limit_bytes=vmem_limit_bytes),
        cost_estimate=cost,
    )(x, w1s, shift.reshape(1, C_IN), w2t, b2f)

    return out.reshape(B, N, C_OUT)


def init_params(key):
    ks = jax.random.split(key, 6)
    return {
        "conv1_w": jax.random.normal(ks[0], (C_IN, C_IN, 1), jnp.float32) * 0.05,
        "conv1_b": jax.random.normal(ks[1], (C_IN,), jnp.float32) * 0.05,
        "bn1_w":   jnp.ones((C_IN,), jnp.float32)
                   + 0.1 * jax.random.normal(ks[2], (C_IN,), jnp.float32),
        "bn1_b":   0.1 * jax.random.normal(ks[3], (C_IN,), jnp.float32),
        "bn1_rm":  jnp.zeros((C_IN,), jnp.float32),   # default running stats
        "bn1_rv":  jnp.ones((C_IN,), jnp.float32),
        "conv2_w": jax.random.normal(ks[4], (C_OUT, C_IN, 1), jnp.float32) * 0.05,
        "conv2_b": jax.random.normal(ks[5], (C_OUT,), jnp.float32) * 0.05,
    }


def _ref_forward(point_features, params):
    """Pure-JAX f32 reference mirroring the torch eval-mode forward."""
    w1, b1 = params["conv1_w"][:, :, 0], params["conv1_b"]
    w2, b2 = params["conv2_w"][:, :, 0], params["conv2_b"]
    eps = 1e-5
    h = jnp.einsum("bnc,oc->bno", point_features, w1) + b1
    h = (h - params["bn1_rm"]) / jnp.sqrt(params["bn1_rv"] + eps)
    h = h * params["bn1_w"] + params["bn1_b"]
    h = jnp.maximum(h, 0.0)
    z = jnp.einsum("bnc,oc->bno", h, w2) + b2
    return z


if __name__ == "__main__":
    key = jax.random.PRNGKey(0)
    kp, kg, kx1, kx2 = jax.random.split(key, 4)

    params = init_params(kp)

    # Case 1: exact-tile rows (B*N = 128).
    B1, N1 = 2, 64
    gfeat1 = jax.random.normal(kg, (B1, 1024), jnp.float32)   # unused by forward
    pfeat1 = jax.random.normal(kx1, (B1, N1, C_IN), jnp.float32)
    out1 = jax.block_until_ready(seg_net_forward(gfeat1, pfeat1, params))
    ref1 = _ref_forward(pfeat1, params)
    assert out1.shape == (B1, N1, C_OUT)
    assert jnp.allclose(out1, ref1, atol=2e-2, rtol=2e-2), "mismatch (exact tile)"

    # Case 2: ragged rows (B*N = 200) -> exercises the partial-block path
    # (clamped input DMA, dropped out-of-bounds output rows) with no wrapper pad.
    B2, N2 = 2, 100
    pfeat2 = jax.random.normal(kx2, (B2, N2, C_IN), jnp.float32)
    out2 = jax.block_until_ready(seg_net_forward(gfeat1, pfeat2, params))
    ref2 = _ref_forward(pfeat2, params)
    assert out2.shape == (B2, N2, C_OUT)
    assert jnp.allclose(out2, ref2, atol=2e-2, rtol=2e-2), "mismatch (partial tile)"

    print("KERNEL_OK")
</pallas_src>

<mosaic_0001>
module attributes {stable_mosaic.version = 11 : i64} {
  func.func @_seg_kernel(%arg0: i32, %arg1: memref<128x128xf32, #tpu.memory_space<vmem>>, %arg2: memref<128x128xbf16, #tpu.memory_space<vmem>>, %arg3: memref<1x128xf32, #tpu.memory_space<vmem>>, %arg4: memref<128x2xbf16, #tpu.memory_space<vmem>>, %arg5: memref<1x2xf32, #tpu.memory_space<vmem>>, %arg6: memref<128x2xf32, #tpu.memory_space<vmem>>) attributes {dimension_semantics = [#tpu.dimension_semantics<parallel>], iteration_bounds = array<i64: 1>, scalar_prefetch = 0 : i64, scratch_operands = 0 : i64, tpu.core_type = #tpu.core_type<tc>, window_params = [{transform_indices = @transform_0, window_bounds = array<i64: 128, 128>}, {pipeline_mode = #tpu.pipeline_mode<synchronous>, transform_indices = @transform_1, window_bounds = array<i64: 128, 128>}, {pipeline_mode = #tpu.pipeline_mode<synchronous>, transform_indices = @transform_2, window_bounds = array<i64: 1, 128>}, {pipeline_mode = #tpu.pipeline_mode<synchronous>, transform_indices = @transform_3, window_bounds = array<i64: 128, 2>}, {pipeline_mode = #tpu.pipeline_mode<synchronous>, transform_indices = @transform_4, window_bounds = array<i64: 1, 2>}, {transform_indices = @transform_5, window_bounds = array<i64: 128, 2>}]} {
    %c0 = arith.constant 0 : index
    %c0_0 = arith.constant 0 : index
    %0 = vector.load %arg1[%c0, %c0_0] : memref<128x128xf32, #tpu.memory_space<vmem>>, vector<128x128xf32>
    %1 = arith.truncf %0 : vector<128x128xf32> to vector<128x128xbf16>
    %c0_1 = arith.constant 0 : index
    %c0_2 = arith.constant 0 : index
    %2 = vector.load %arg2[%c0_1, %c0_2] : memref<128x128xbf16, #tpu.memory_space<vmem>>, vector<128x128xbf16>
    %cst = arith.constant dense<0.000000e+00> : vector<128x128xf32>
    %3 = tpu.matmul %1, %2, %cst {dimension_numbers = #tpu.dot_dimension_numbers<[1], [0], [0], [1], [0, 0, 1, 1], [], []>} : vector<128x128xbf16>, vector<128x128xbf16>, vector<128x128xf32> -> vector<128x128xf32>
    %c0_3 = arith.constant 0 : index
    %c0_4 = arith.constant 0 : index
    %4 = vector.load %arg3[%c0_3, %c0_4] : memref<1x128xf32, #tpu.memory_space<vmem>>, vector<1x128xf32>
    %5 = vector.broadcast %4 : vector<1x128xf32> to vector<128x128xf32>
    %6 = arith.addf %3, %5 : vector<128x128xf32>
    %cst_5 = arith.constant 0.000000e+00 : f32
    %7 = vector.broadcast %cst_5 : f32 to vector<128x128xf32>
    %8 = arith.maximumf %6, %7 : vector<128x128xf32>
    %9 = arith.truncf %8 : vector<128x128xf32> to vector<128x128xbf16>
    %c0_6 = arith.constant 0 : index
    %c0_7 = arith.constant 0 : index
    %10 = vector.load %arg4[%c0_6, %c0_7] : memref<128x2xbf16, #tpu.memory_space<vmem>>, vector<128x2xbf16>
    %cst_8 = arith.constant dense<0.000000e+00> : vector<128x2xf32>
    %11 = tpu.matmul %9, %10, %cst_8 {dimension_numbers = #tpu.dot_dimension_numbers<[1], [0], [0], [1], [0, 0, 1, 1], [], []>} : vector<128x128xbf16>, vector<128x2xbf16>, vector<128x2xf32> -> vector<128x2xf32>
    %c0_9 = arith.constant 0 : index
    %c0_10 = arith.constant 0 : index
    %12 = vector.load %arg5[%c0_9, %c0_10] : memref<1x2xf32, #tpu.memory_space<vmem>>, vector<1x2xf32>
    %13 = vector.broadcast %12 : vector<1x2xf32> to vector<128x2xf32>
    %14 = arith.addf %11, %13 : vector<128x2xf32>
    %c0_11 = arith.constant 0 : index
    %c0_12 = arith.constant 0 : index
    %15 = vector.load %arg6[%c0_11, %c0_12] : memref<128x2xf32, #tpu.memory_space<vmem>>, vector<128x2xf32>
    tpu.vector_store %arg6[%c0_11, %c0_12], %14 {strides = array<i32>} : memref<128x2xf32, #tpu.memory_space<vmem>>, vector<128x2xf32>,
    return
  }
  func.func @transform_0(%arg0: i32) -> (i32, i32) {
    %c0_i32 = arith.constant 0 : i32
    %c0_i32_0 = arith.constant 0 : i32
    return %arg0, %c0_i32 : i32, i32
  }
  func.func @transform_1(%arg0: i32) -> (i32, i32) {
    %c0_i32 = arith.constant 0 : i32
    %c0_i32_0 = arith.constant 0 : i32
    %c0_i32_1 = arith.constant 0 : i32
    return %c0_i32, %c0_i32_0 : i32, i32
  }
  func.func @transform_2(%arg0: i32) -> (i32, i32) {
    %c0_i32 = arith.constant 0 : i32
    %c0_i32_0 = arith.constant 0 : i32
    %c0_i32_1 = arith.constant 0 : i32
    return %c0_i32, %c0_i32_0 : i32, i32
  }
  func.func @transform_3(%arg0: i32) -> (i32, i32) {
    %c0_i32 = arith.constant 0 : i32
    %c0_i32_0 = arith.constant 0 : i32
    %c0_i32_1 = arith.constant 0 : i32
    return %c0_i32, %c0_i32_0 : i32, i32
  }
  func.func @transform_4(%arg0: i32) -> (i32, i32) {
    %c0_i32 = arith.constant 0 : i32
    %c0_i32_0 = arith.constant 0 : i32
    %c0_i32_1 = arith.constant 0 : i32
    return %c0_i32, %c0_i32_0 : i32, i32
  }
  func.func @transform_5(%arg0: i32) -> (i32, i32) {
    %c0_i32 = arith.constant 0 : i32
    %c0_i32_0 = arith.constant 0 : i32
    return %arg0, %c0_i32 : i32, i32
  }
}

</mosaic_0001>

<bundles_post_ra>
// kernel: tpu_custom_call.1
= control target key start
LH: loop header
LB: loop body
LE: loop exit
PB: predicated region body
PF: predicated region fallthrough
CT: control target
= control target key end

     0   :  { %10 = vsyncpa [#allocation3], 0  ;;  %s598_s18 = smov [#allocation2]   ;;  %s761_s0 = inlined_call_operand.hbm [shape: f32[128,128], index: 0, kind: input, shape index: {}]   ;;  %s762_s1 = inlined_call_operand.vmem [shape: bf16[128,128], index: 1, kind: input, shape index: {}]   ;;  %s763_s2 = inlined_call_operand.vmem [shape: f32[1,128], index: 2, kind: input, shape index: {}]   ;;  %s764_s3 = inlined_call_operand.vmem [shape: bf16[128,2], index: 3, kind: input, shape index: {}]   ;;  %s765_s4 = inlined_call_operand.vmem [shape: f32[1,2], index: 4, kind: input, shape index: {}]   ;;  %s766_s5 = inlined_call_operand.vmem [shape: f32[128,2], index: 5, kind: output, shape index: {}]  }
   0x1   :  { %s16_s19 = sshll.u32 %s598_s18, 4  ;;  %s574_s22 = scalar_lea.hbm %s761_s0, 2048  ;;  %s17_s19 = int_to_ptr.vmem [resolvable:$true] %s16_s19 }
   0x2   :  { %p575_p0 = scmp.ne.s32.totalorder %s761_s0, %s574_s22  ;;  %p578_p1 = scmp.lt.u32.totalorder %s574_s22, %s761_s0 }
   0x4   :  { %p580_p2 = pnand %p578_p1, %p575_p0 }
   0x6   :  { %583 = shalt.err (!%p580_p2)
}
   0x7   :  { %s584_s27 = scalar_lea.vmem %s17_s19, 2048  ;;  %p589_p4 = scmp.lt.s32.totalorder %s17_s19, %s17_s19 }
   0x8   :  { %p585_p3 = scmp.ne.s32.totalorder %s17_s19, %s584_s27  ;;  %p590_p5 = scmp.lt.s32.totalorder %s584_s27, %s584_s27 }
   0xa   :  { %p591_p6 = por %p590_p5, %p589_p4 }
   0xc   :  { %p592_p7 = pnand %p591_p6, %p585_p3 }
   0xe   :  { %595 = shalt.err (!%p592_p7)
}
   0xf   :  { %s599_s28 = smov 128   ;;  %s600_s29 = smov 8  }
  0x10   :  { %22 = dma.hbm_to_vmem [thread:$0]  %s761_s0, 2048, %s17_s19, [#allocation3], %s599_s28, %s599_s28, %s600_s29  }
  0x11   :  { %596 = dma.done.wait [#allocation3], 2048  }
  0x12   :  { %597 = vsyncadd [#allocation3], 4294965248  ;;  %v558_v0 = vld [vmem:[%s762_s1] sm:$0xff]   ;;  %v559_v1 = vld [vmem:[%s762_s1 + $0x8] sm:$0xff]   ;;  %vm419_vm0 = vcmask 15360  }
  0x13   :  { %491 = vmatprep.subr.bf16.mxu0 %v558_v0  ;;  %v560_v2 = vld [vmem:[%s762_s1 + $0x10] sm:$0xff]   ;;  %v561_v3 = vld [vmem:[%s762_s1 + $0x18] sm:$0xff]   ;;  %v35_v4 = vld [vmem:[#allocation2] sm:$0xff] }
  0x14   :  { %492 = vmatpush3.bf16.msra.mxu0 %v558_v0  ;;  %v36_v5 = vld [vmem:[#allocation2 + $0x8] sm:$0xff]  ;;  %v562_v7 = vld [vmem:[%s762_s1 + $0x20] sm:$0xff]   ;;  %v568_v11 = vld [vmem:[%s764_s3 + $0x10] sm:$0xff]  }
  0x15   :  { %493 = vmatprep.subr.bf16.mxu0 %v559_v1  ;;  %v51_v6 = vpack.c.bf16 %v36_v5, %v35_v4  ;;  %v566_v8 = vld [vmem:[%s764_s3] sm:$0xff]   ;;  %v567_v9 = vld [vmem:[%s764_s3 + $0x8] sm:$0xff]   ;;  %v564_v12 = vld [vmem:[%s762_s1 + $0x30] sm:$0xff]  }
  0x16   :  { %v563_v10 = vld [vmem:[%s762_s1 + $0x28] sm:$0xff]   ;;  %523 = vmatprep.subr.bf16.mxu1 %v566_v8  ;;  %v569_v13 = vld [vmem:[%s764_s3 + $0x18] sm:$0xff]   ;;  %v570_v15 = vld [vmem:[%s764_s3 + $0x20] sm:$0xff]  }
  0x17   :  { %507 = vmatprep.mubr.bf16.mxu0 %v51_v6  ;;  %524 = vmatpush3.bf16.msra.mxu1 %v566_v8  ;;  %v565_v14 = vld [vmem:[%s762_s1 + $0x38] sm:$0xff]   ;;  %v37_v16 = vld [vmem:[#allocation2 + $0x10] sm:$0xff]  ;;  %v39_v18 = vld [vmem:[#allocation2 + $0x20] sm:$0xff] }
  0x18   :  { %494 = vmatpush3.bf16.msra.mxu0 %v559_v1  ;;  %525 = vmatprep.subr.bf16.mxu1 %v567_v9  ;;  %v38_v17 = vld [vmem:[#allocation2 + $0x18] sm:$0xff]  ;;  %v40_v19 = vld [vmem:[#allocation2 + $0x28] sm:$0xff]  ;;  %v41_v23 = vld [vmem:[#allocation2 + $0x30] sm:$0xff] }
  0x19   :  { %495 = vmatprep.subr.bf16.mxu0 %v560_v2  ;;  %v52_v20 = vpack.c.bf16 %v38_v17, %v37_v16  ;;  %v571_v21 = vld [vmem:[%s764_s3 + $0x28] sm:$0xff]   ;;  %v53_v22 = vpack.c.bf16 %v40_v19, %v39_v18  ;;  %v42_v24 = vld [vmem:[#allocation2 + $0x38] sm:$0xff]  ;;  %v43_v25 = vld [vmem:[#allocation2 + $0x40] sm:$0xff] }
  0x1a   :  { %v44_v26 = vld [vmem:[#allocation2 + $0x48] sm:$0xff]  ;;  %v54_v27 = vpack.c.bf16 %v42_v24, %v41_v23  ;;  %v45_v29 = vld [vmem:[#allocation2 + $0x50] sm:$0xff]  ;;  %v46_v30 = vld [vmem:[#allocation2 + $0x58] sm:$0xff] }
  0x1b   :  { %526 = vmatpush3.bf16.msra.mxu1 %v567_v9  ;;  %v55_v28 = vpack.c.bf16 %v44_v26, %v43_v25  ;;  %v47_v31 = vld [vmem:[#allocation2 + $0x60] sm:$0xff]  ;;  %v48_v32 = vld [vmem:[#allocation2 + $0x68] sm:$0xff]  ;;  %v56_v33 = vpack.c.bf16 %v46_v30, %v45_v29  ;;  %v49_v35 = vld [vmem:[#allocation2 + $0x70] sm:$0xff] }
  0x1c   :  { %496 = vmatpush3.bf16.msra.mxu0 %v560_v2  ;;  %527 = vmatprep.subr.bf16.mxu1 %v568_v11  ;;  %v57_v34 = vpack.c.bf16 %v48_v32, %v47_v31  ;;  %v50_v36 = vld [vmem:[#allocation2 + $0x78] sm:$0xff]  ;;  %v572_v38 = vld [vmem:[%s764_s3 + $0x30] sm:$0xff]   ;;  %v441_v40 = vld [vmem:[%s763_s2] ss:$0 sm:$0xff] }
  0x1d   :  { %497 = vmatprep.subr.bf16.mxu0 %v561_v3  ;;  %v58_v37 = vpack.c.bf16 %v50_v36, %v49_v35  ;;  %v573_v39 = vld [vmem:[%s764_s3 + $0x38] sm:$0xff]  }
  0x1f   :  { %528 = vmatpush3.bf16.msra.mxu1 %v568_v11 }
  0x20   :  { %498 = vmatpush3.bf16.msra.mxu0 %v561_v3  ;;  %529 = vmatprep.subr.bf16.mxu1 %v569_v13 }
  0x21   :  { %499 = vmatprep.subr.bf16.mxu0 %v562_v7 }
  0x23   :  { %530 = vmatpush3.bf16.msra.mxu1 %v569_v13 }
  0x24   :  { %500 = vmatpush3.bf16.msra.mxu0 %v562_v7  ;;  %531 = vmatprep.subr.bf16.mxu1 %v570_v15 }
  0x25   :  { %501 = vmatprep.subr.bf16.mxu0 %v563_v10 }
  0x27   :  { %532 = vmatpush3.bf16.msra.mxu1 %v570_v15 }
  0x28   :  { %502 = vmatpush3.bf16.msra.mxu0 %v563_v10  ;;  %533 = vmatprep.subr.bf16.mxu1 %v571_v21 }
  0x29   :  { %503 = vmatprep.subr.bf16.mxu0 %v564_v12 }
  0x2b   :  { %534 = vmatpush3.bf16.msra.mxu1 %v571_v21 }
  0x2c   :  { %504 = vmatpush3.bf16.msra.mxu0 %v564_v12  ;;  %535 = vmatprep.subr.bf16.mxu1 %v572_v38 }
  0x2d   :  { %505 = vmatprep.subr.bf16.mxu0 %v565_v14 }
  0x2f   :  { %536 = vmatpush3.bf16.msra.mxu1 %v572_v38 }
  0x30   :  { %506 = vmatpush3.bf16.msra.mxu0 %v565_v14  ;;  %537 = vmatprep.subr.bf16.mxu1 %v573_v39 }
  0x33   :  { %508 = vmatmul.mubr.bf16.vlgmr.msra.gmra.mrb[0].mxu0 %v52_v20  ;;  %538 = vmatpush3.bf16.msra.mxu1 %v573_v39 }
  0x34   :  { %511 = vmatprep.mubr.bf16.mxu0 %v53_v22 }
  0x3b   :  { %512 = vmatmul.mubr.bf16.gmra.mrb[4].mxu0 %v54_v27 }
  0x3c   :  { %515 = vmatprep.mubr.bf16.mxu0 %v55_v28 }
  0x43   :  { %516 = vmatmul.mubr.bf16.gmra.mrb[8].mxu0 %v56_v33  ;;  %v450_v33 = vld [vmem:[%s765_s4] ss:$0 sm:$0xff] }
  0x44   :  { %519 = vmatprep.mubr.bf16.mxu0 %v57_v34 }
  0x4b   :  { %520 = vmatmul.mubr.bf16.gmra.mrb[12].mxu0 %v58_v37 }
 0x106   :  { %v509_v41 = vpop.f32.mrb[0].mxu0 }
 0x107   :  { %v173_v42 = vadd.f32 %v509_v41, %v441_v40  ;;  %v164_v43 = vpop.f32.mrb[1].mxu0 }
 0x108   :  { %v165_v44 = vadd.f32 %v441_v40, %v164_v43  ;;  %v510_v45 = vpop.f32.mrb[2].mxu0 }
 0x109   :  { %v176_v46 = vadd.f32 %v510_v45, %v441_v40  ;;  %v167_v47 = vpop.f32.mrb[3].mxu0  ;;  %v229_v49 = vmax.f32 %v173_v42, 0.0 }
 0x10a   :  { %v168_v48 = vadd.f32 %v441_v40, %v167_v47  ;;  %v227_v51 = vmax.f32 %v165_v44, 0.0 }
 0x10b   :  { %v230_v50 = vmax.f32 %v176_v46, 0.0 }
 0x10c   :  { %v228_v52 = vmax.f32 %v168_v48, 0.0 }
 0x10d   :  { %v244_v53 = vpack.c.bf16 %v230_v50, %v229_v49 }
 0x10e   :  { %v513_v54 = vpop.f32.mrb[4].mxu0  ;;  %v243_v55 = vpack.c.bf16 %v228_v52, %v227_v51 }
 0x10f   :  { %v189_v56 = vadd.f32 %v513_v54, %v441_v40  ;;  %v180_v57 = vpop.f32.mrb[5].mxu0 }
 0x110   :  { %v181_v58 = vadd.f32 %v441_v40, %v180_v57  ;;  %v514_v59 = vpop.f32.mrb[6].mxu0  ;;  %539 = vmatprep.mubr.bf16.mxu1 %v243_v55 }
 0x111   :  { %v192_v60 = vadd.f32 %v514_v59, %v441_v40  ;;  %v183_v61 = vpop.f32.mrb[7].mxu0  ;;  %540 = vmatmul.mubr.bf16.vlgmr.msra.gmra.mrb[0].mxu1 %v244_v53  ;;  %v233_v63 = vmax.f32 %v189_v56, 0.0 }
 0x112   :  { %v184_v62 = vadd.f32 %v441_v40, %v183_v61  ;;  %v231_v1 = vmax.f32 %v181_v58, 0.0 }
 0x113   :  { %v234_v0 = vmax.f32 %v192_v60, 0.0 }
 0x114   :  { %v232_v2 = vmax.f32 %v184_v62, 0.0 }
 0x115   :  { %v246_v3 = vpack.c.bf16 %v234_v0, %v233_v63 }
 0x116   :  { %v245_v4 = vpack.c.bf16 %v232_v2, %v231_v1  ;;  %v517_v5 = vpop.f32.mrb[8].mxu0 }
 0x117   :  { %v205_v6 = vadd.f32 %v517_v5, %v441_v40  ;;  %v196_v7 = vpop.f32.mrb[9].mxu0 }
 0x118   :  { %v197_v8 = vadd.f32 %v441_v40, %v196_v7  ;;  %v518_v9 = vpop.f32.mrb[10].mxu0  ;;  %543 = vmatprep.mubr.bf16.mxu1 %v245_v4 }
 0x119   :  { %v208_v10 = vadd.f32 %v518_v9, %v441_v40  ;;  %v199_v11 = vpop.f32.mrb[11].mxu0  ;;  %544 = vmatmul.mubr.bf16.gmra.mrb[4].mxu1 %v246_v3  ;;  %v237_v13 = vmax.f32 %v205_v6, 0.0 }
 0x11a   :  { %v200_v12 = vadd.f32 %v441_v40, %v199_v11  ;;  %v235_v15 = vmax.f32 %v197_v8, 0.0 }
 0x11b   :  { %v238_v14 = vmax.f32 %v208_v10, 0.0 }
 0x11c   :  { %v236_v16 = vmax.f32 %v200_v12, 0.0 }
 0x11d   :  { %v248_v17 = vpack.c.bf16 %v238_v14, %v237_v13 }
 0x11e   :  { %v247_v18 = vpack.c.bf16 %v236_v16, %v235_v15  ;;  %v521_v19 = vpop.f32.mrb[12].mxu0 }
 0x11f   :  { %v221_v20 = vadd.f32 %v521_v19, %v441_v40  ;;  %v212_v21 = vpop.f32.mrb[13].mxu0 }
 0x120   :  { %v213_v22 = vadd.f32 %v441_v40, %v212_v21  ;;  %v522_v23 = vpop.f32.mrb[14].mxu0  ;;  %547 = vmatprep.mubr.bf16.mxu1 %v247_v18 }
 0x121   :  { %v224_v24 = vadd.f32 %v522_v23, %v441_v40  ;;  %v215_v25 = vpop.f32.mrb[15].mxu0  ;;  %548 = vmatmul.mubr.bf16.gmra.mrb[8].mxu1 %v248_v17  ;;  %v241_v27 = vmax.f32 %v221_v20, 0.0 }
 0x122   :  { %v216_v26 = vadd.f32 %v441_v40, %v215_v25  ;;  %v239_v29 = vmax.f32 %v213_v22, 0.0 }
 0x123   :  { %v242_v28 = vmax.f32 %v224_v24, 0.0 }
 0x124   :  { %v240_v30 = vmax.f32 %v216_v26, 0.0 }
 0x125   :  { %v250_v31 = vpack.c.bf16 %v242_v28, %v241_v27 }
 0x126   :  { %v249_v32 = vpack.c.bf16 %v240_v30, %v239_v29 }
 0x128   :  { %551 = vmatprep.mubr.bf16.mxu1 %v249_v32 }
 0x129   :  { %552 = vmatmul.mubr.bf16.gmra.mrb[12].mxu1 %v250_v31 }
 0x1e4   :  { %v541_v34 = vpop.f32.mrb[0].mxu1 }
 0x1e5   :  { %v365_v35 = vadd.f32 %v541_v34, %v450_v33  ;;  %v356_v36 = vpop.f32.mrb[1].mxu1 }
 0x1e6   :  { %v357_v37 = vadd.f32 %v450_v33, %v356_v36  ;;  %v542_v38 = vpop.f32.mrb[2].mxu1 }
 0x1e7   :  { %422 = vst.msk [vmem:[%s766_s5 + $0x10] sm:$0xff] %vm419_vm0, %v365_v35  ;;  %v368_v39 = vadd.f32 %v542_v38, %v450_v33  ;;  %v359_v40 = vpop.f32.mrb[3].mxu1 }
 0x1e8   :  { %420 = vst.msk [vmem:[%s766_s5] sm:$0xff] %vm419_vm0, %v357_v37  ;;  %v360_v41 = vadd.f32 %v450_v33, %v359_v40 }
 0x1e9   :  { %423 = vst.msk [vmem:[%s766_s5 + $0x18] sm:$0xff] %vm419_vm0, %v368_v39 }
 0x1ea   :  { %421 = vst.msk [vmem:[%s766_s5 + $0x8] sm:$0xff] %vm419_vm0, %v360_v41 }
 0x1ec   :  { %v545_v42 = vpop.f32.mrb[4].mxu1 }
 0x1ed   :  { %v381_v43 = vadd.f32 %v545_v42, %v450_v33  ;;  %v372_v44 = vpop.f32.mrb[5].mxu1 }
 0x1ee   :  { %v373_v45 = vadd.f32 %v450_v33, %v372_v44  ;;  %v546_v46 = vpop.f32.mrb[6].mxu1 }
 0x1ef   :  { %426 = vst.msk [vmem:[%s766_s5 + $0x30] sm:$0xff] %vm419_vm0, %v381_v43  ;;  %v384_v47 = vadd.f32 %v546_v46, %v450_v33  ;;  %v375_v48 = vpop.f32.mrb[7].mxu1 }
 0x1f0   :  { %424 = vst.msk [vmem:[%s766_s5 + $0x20] sm:$0xff] %vm419_vm0, %v373_v45  ;;  %v376_v49 = vadd.f32 %v450_v33, %v375_v48 }
 0x1f1   :  { %427 = vst.msk [vmem:[%s766_s5 + $0x38] sm:$0xff] %vm419_vm0, %v384_v47 }
 0x1f2   :  { %425 = vst.msk [vmem:[%s766_s5 + $0x28] sm:$0xff] %vm419_vm0, %v376_v49 }
 0x1f4   :  { %v549_v50 = vpop.f32.mrb[8].mxu1 }
 0x1f5   :  { %v397_v51 = vadd.f32 %v549_v50, %v450_v33  ;;  %v388_v52 = vpop.f32.mrb[9].mxu1 }
 0x1f6   :  { %v389_v53 = vadd.f32 %v450_v33, %v388_v52  ;;  %v550_v54 = vpop.f32.mrb[10].mxu1 }
 0x1f7   :  { %430 = vst.msk [vmem:[%s766_s5 + $0x50] sm:$0xff] %vm419_vm0, %v397_v51  ;;  %v400_v55 = vadd.f32 %v550_v54, %v450_v33  ;;  %v391_v56 = vpop.f32.mrb[11].mxu1 }
 0x1f8   :  { %428 = vst.msk [vmem:[%s766_s5 + $0x40] sm:$0xff] %vm419_vm0, %v389_v53  ;;  %v392_v57 = vadd.f32 %v450_v33, %v391_v56 }
 0x1f9   :  { %431 = vst.msk [vmem:[%s766_s5 + $0x58] sm:$0xff] %vm419_vm0, %v400_v55 }
 0x1fa   :  { %429 = vst.msk [vmem:[%s766_s5 + $0x48] sm:$0xff] %vm419_vm0, %v392_v57 }
 0x1fc   :  { %v553_v58 = vpop.f32.mrb[12].mxu1 }
 0x1fd   :  { %v413_v59 = vadd.f32 %v553_v58, %v450_v33  ;;  %v404_v60 = vpop.f32.mrb[13].mxu1 }
 0x1fe   :  { %v405_v61 = vadd.f32 %v450_v33, %v404_v60  ;;  %v554_v62 = vpop.f32.mrb[14].mxu1 }
 0x1ff   :  { %434 = vst.msk [vmem:[%s766_s5 + $0x70] sm:$0xff] %vm419_vm0, %v413_v59  ;;  %v416_v63 = vadd.f32 %v554_v62, %v450_v33  ;;  %v407_v0 = vpop.f32.mrb[15].mxu1 }
 0x200   :  { %432 = vst.msk [vmem:[%s766_s5 + $0x60] sm:$0xff] %vm419_vm0, %v405_v61  ;;  %v408_v1 = vadd.f32 %v450_v33, %v407_v0 }
 0x201   :  { %435 = vst.msk [vmem:[%s766_s5 + $0x78] sm:$0xff] %vm419_vm0, %v416_v63 }
 0x202   :  { %433 = vst.msk [vmem:[%s766_s5 + $0x68] sm:$0xff] %vm419_vm0, %v408_v1 }
 0x203   :  { %440 = vsyncpa [#allocation3], 1 }

</bundles_post_ra>
